<compile_context>
chip_gen: v7x
topology: tpu7x:2x2x1
jax: 0.10.0
libtpu: 0.0.40
codegen_flags: <defaults>
</compile_context>

<pallas_src>
import math

import jax
import jax.numpy as jnp
from jax.experimental import pallas as pl
from jax.experimental.pallas import tpu as pltpu


def critic_mlp_kernel(x_ref, w1_ref, b1_ref, w2_ref, b2_ref, w3_ref, b3_ref, o_ref):
    # x_ref: [TB, F] (compute dtype); w1: [F,128], w2: [128,64] (compute dtype)
    # b1: [1,128] f32; b2: [1,64] f32; w3: [1,64] f32; b3: [1,1] f32
    # o_ref: [1, 1, TB] f32 (batch on the lane axis -> unmasked stores)
    x = x_ref[...]
    h1 = jnp.dot(x, w1_ref[...], preferred_element_type=jnp.float32) + b1_ref[...]
    h1 = jnp.maximum(h1, 0.0).astype(w2_ref.dtype)            # ReLU, back to MXU dtype
    h2 = jnp.dot(h1, w2_ref[...], preferred_element_type=jnp.float32) + b2_ref[...]
    h2 = jnp.maximum(h2, 0.0)                                  # ReLU, f32
    # Layer 3 (64 -> 1): VPU multiply + cross-lane reduce instead of N=1 matmul.
    row = jnp.sum(h2 * w3_ref[...], axis=-1)                   # [TB]
    out = row[None, None, :] + b3_ref[...]                     # [1, 1, TB]
    o_ref[...] = out.astype(o_ref.dtype)


def _round_up(x, m):
    return ((x + m - 1) // m) * m


def critic_forward(x, params, *, batch_tile=512, compute_dtype=jnp.bfloat16):
    """x: [B, F] float32.  params: dict of weights/biases (see init_params)."""
    B, F = x.shape

    # Choose the batch tile: whole (8-padded) batch if it fits in one tile,
    # otherwise MXU-aligned batch_tile with ceil-div grid.
    b8 = _round_up(B, 8)
    if b8 <= batch_tile:
        tile = b8
        grid_n = 1
    else:
        tile = batch_tile
        grid_n = pl.cdiv(B, tile)
    padded_B = grid_n * tile

    if padded_B != B:
        x = jnp.pad(x, ((0, padded_B - B), (0, 0)))

    x = x.astype(compute_dtype)
    w1 = params["w1"].astype(compute_dtype)   # [F, 128]
    w2 = params["w2"].astype(compute_dtype)   # [128, 64]
    b1 = params["b1"].astype(jnp.float32)     # [1, 128]
    b2 = params["b2"].astype(jnp.float32)     # [1, 64]
    w3 = params["w3"].astype(jnp.float32)     # [1, 64]
    b3 = params["b3"].astype(jnp.float32)     # [1, 1]

    out3 = pl.pallas_call(
        critic_mlp_kernel,
        out_shape=jax.ShapeDtypeStruct((grid_n, 1, tile), jnp.float32),
        grid_spec=pltpu.PrefetchScalarGridSpec(
            num_scalar_prefetch=0,
            grid=(grid_n,),
            in_specs=[
                pl.BlockSpec((tile, F), lambda i: (i, 0)),     # x tile
                pl.BlockSpec(w1.shape, lambda i: (0, 0)),      # W1
                pl.BlockSpec(b1.shape, lambda i: (0, 0)),      # b1
                pl.BlockSpec(w2.shape, lambda i: (0, 0)),      # W2
                pl.BlockSpec(b2.shape, lambda i: (0, 0)),      # b2
                pl.BlockSpec(w3.shape, lambda i: (0, 0)),      # W3 (row)
                pl.BlockSpec(b3.shape, lambda i: (0, 0)),      # b3
            ],
            out_specs=pl.BlockSpec((1, 1, tile), lambda i: (i, 0, 0)),
        ),
        compiler_params=pltpu.CompilerParams(
            dimension_semantics=("parallel",),
            vmem_limit_bytes=32 * 1024 * 1024,
        ),
    )(x, w1, b1, w2, b2, w3, b3)

    # (grid_n, 1, tile) -> (padded_B, 1) -> (B, 1)
    return out3.reshape(padded_B, 1)[:B]


def init_params(key, feature_dim):
    """Deterministic init mirroring PyTorch Linear default (U[-1/sqrt(fan_in), +])."""
    keys = jax.random.split(key, 6)

    def unif(k, shape, fan_in):
        bound = 1.0 / math.sqrt(fan_in)
        return jax.random.uniform(k, shape, minval=-bound, maxval=bound,
                                  dtype=jnp.float32)

    params = {
        "w1": unif(keys[0], (feature_dim, 128), feature_dim),  # [in, out]
        "b1": unif(keys[1], (1, 128), feature_dim),
        "w2": unif(keys[2], (128, 64), 128),                   # [in, out]
        "b2": unif(keys[3], (1, 64), 128),
        "w3": unif(keys[4], (1, 64), 64),                      # PyTorch [out, in] row
        "b3": unif(keys[5], (1, 1), 64),
    }
    return params


def reference_forward(x, params, compute_dtype=jnp.bfloat16):
    """Pure-JAX reference using the same compute dtype / f32 accumulation."""
    xc = x.astype(compute_dtype)
    w1 = params["w1"].astype(compute_dtype)
    w2 = params["w2"].astype(compute_dtype)
    h1 = jnp.maximum(
        jnp.dot(xc, w1, preferred_element_type=jnp.float32) + params["b1"], 0.0)
    h2 = jnp.maximum(
        jnp.dot(h1.astype(compute_dtype), w2,
                preferred_element_type=jnp.float32) + params["b2"], 0.0)
    return jnp.sum(h2 * params["w3"], axis=-1, keepdims=True) + params["b3"]


if __name__ == "__main__":
    key = jax.random.PRNGKey(0)
    k_param, k_x1, k_x2 = jax.random.split(key, 3)

    feature_dim = 32
    params = init_params(k_param, feature_dim)

    # Small test (single grid step, whole batch resident in VMEM).
    batch = 8
    x_small = jax.random.normal(k_x1, (batch, feature_dim), dtype=jnp.float32)
    out_small = jax.block_until_ready(critic_forward(x_small, params))
    ref_small = reference_forward(x_small, params)
    assert out_small.shape == (batch, 1), out_small.shape
    assert jnp.allclose(out_small, ref_small, atol=1e-3, rtol=1e-3), "small-batch mismatch"

    # Larger ragged batch: exercises multi-step grid, padding and lane-dense output.
    big_batch = 1000
    x_big = jax.random.normal(k_x2, (big_batch, feature_dim), dtype=jnp.float32)
    out_big = jax.block_until_ready(critic_forward(x_big, params, batch_tile=256))
    ref_big = reference_forward(x_big, params)
    assert out_big.shape == (big_batch, 1), out_big.shape
    assert jnp.allclose(out_big, ref_big, atol=1e-3, rtol=1e-3), "large-batch mismatch"

    print("KERNEL_OK")
</pallas_src>

<mosaic_0001>
module attributes {stable_mosaic.version = 11 : i64} {
  func.func @critic_mlp_kernel(%arg0: i32, %arg1: memref<8x32xbf16, #tpu.memory_space<vmem>>, %arg2: memref<32x128xbf16, #tpu.memory_space<vmem>>, %arg3: memref<1x128xf32, #tpu.memory_space<vmem>>, %arg4: memref<128x64xbf16, #tpu.memory_space<vmem>>, %arg5: memref<1x64xf32, #tpu.memory_space<vmem>>, %arg6: memref<1x64xf32, #tpu.memory_space<vmem>>, %arg7: memref<1x1xf32, #tpu.memory_space<vmem>>, %arg8: memref<1x1x8xf32, #tpu.memory_space<vmem>>) attributes {dimension_semantics = [#tpu.dimension_semantics<parallel>], iteration_bounds = array<i64: 1>, scalar_prefetch = 0 : i64, scratch_operands = 0 : i64, tpu.core_type = #tpu.core_type<tc>, window_params = [{transform_indices = @transform_0, window_bounds = array<i64: 8, 32>}, {pipeline_mode = #tpu.pipeline_mode<synchronous>, transform_indices = @transform_1, window_bounds = array<i64: 32, 128>}, {pipeline_mode = #tpu.pipeline_mode<synchronous>, transform_indices = @transform_2, window_bounds = array<i64: 1, 128>}, {pipeline_mode = #tpu.pipeline_mode<synchronous>, transform_indices = @transform_3, window_bounds = array<i64: 128, 64>}, {pipeline_mode = #tpu.pipeline_mode<synchronous>, transform_indices = @transform_4, window_bounds = array<i64: 1, 64>}, {pipeline_mode = #tpu.pipeline_mode<synchronous>, transform_indices = @transform_5, window_bounds = array<i64: 1, 64>}, {pipeline_mode = #tpu.pipeline_mode<synchronous>, transform_indices = @transform_6, window_bounds = array<i64: 1, 1>}, {transform_indices = @transform_7, window_bounds = array<i64: 1, 1, 8>}]} {
    %c0 = arith.constant 0 : index
    %c0_0 = arith.constant 0 : index
    %0 = vector.load %arg1[%c0, %c0_0] : memref<8x32xbf16, #tpu.memory_space<vmem>>, vector<8x32xbf16>
    %c0_1 = arith.constant 0 : index
    %c0_2 = arith.constant 0 : index
    %1 = vector.load %arg2[%c0_1, %c0_2] : memref<32x128xbf16, #tpu.memory_space<vmem>>, vector<32x128xbf16>
    %cst = arith.constant dense<0.000000e+00> : vector<8x128xf32>
    %2 = tpu.matmul %0, %1, %cst {dimension_numbers = #tpu.dot_dimension_numbers<[1], [0], [0], [1], [0, 0, 1, 1], [], []>} : vector<8x32xbf16>, vector<32x128xbf16>, vector<8x128xf32> -> vector<8x128xf32>
    %c0_3 = arith.constant 0 : index
    %c0_4 = arith.constant 0 : index
    %3 = vector.load %arg3[%c0_3, %c0_4] : memref<1x128xf32, #tpu.memory_space<vmem>>, vector<1x128xf32>
    %4 = vector.broadcast %3 : vector<1x128xf32> to vector<8x128xf32>
    %5 = arith.addf %2, %4 : vector<8x128xf32>
    %cst_5 = arith.constant 0.000000e+00 : f32
    %6 = vector.broadcast %cst_5 : f32 to vector<8x128xf32>
    %7 = arith.maximumf %5, %6 : vector<8x128xf32>
    %8 = arith.truncf %7 : vector<8x128xf32> to vector<8x128xbf16>
    %c0_6 = arith.constant 0 : index
    %c0_7 = arith.constant 0 : index
    %9 = vector.load %arg4[%c0_6, %c0_7] : memref<128x64xbf16, #tpu.memory_space<vmem>>, vector<128x64xbf16>
    %cst_8 = arith.constant dense<0.000000e+00> : vector<8x64xf32>
    %10 = tpu.matmul %8, %9, %cst_8 {dimension_numbers = #tpu.dot_dimension_numbers<[1], [0], [0], [1], [0, 0, 1, 1], [], []>} : vector<8x128xbf16>, vector<128x64xbf16>, vector<8x64xf32> -> vector<8x64xf32>
    %c0_9 = arith.constant 0 : index
    %c0_10 = arith.constant 0 : index
    %11 = vector.load %arg5[%c0_9, %c0_10] : memref<1x64xf32, #tpu.memory_space<vmem>>, vector<1x64xf32>
    %12 = vector.broadcast %11 : vector<1x64xf32> to vector<8x64xf32>
    %13 = arith.addf %10, %12 : vector<8x64xf32>
    %cst_11 = arith.constant 0.000000e+00 : f32
    %14 = vector.broadcast %cst_11 : f32 to vector<8x64xf32>
    %15 = arith.maximumf %13, %14 : vector<8x64xf32>
    %c0_12 = arith.constant 0 : index
    %c0_13 = arith.constant 0 : index
    %16 = vector.load %arg6[%c0_12, %c0_13] : memref<1x64xf32, #tpu.memory_space<vmem>>, vector<1x64xf32>
    %17 = vector.broadcast %16 : vector<1x64xf32> to vector<8x64xf32>
    %18 = arith.mulf %15, %17 : vector<8x64xf32>
    %cst_14 = arith.constant dense<0.000000e+00> : vector<8xf32>
    %19 = vector.multi_reduction <add>, %18, %cst_14 [1] : vector<8x64xf32> to vector<8xf32>
    %20 = vector.shape_cast %19 : vector<8xf32> to vector<1x1x8xf32>
    %c0_15 = arith.constant 0 : index
    %c0_16 = arith.constant 0 : index
    %21 = vector.load %arg7[%c0_15, %c0_16] : memref<1x1xf32, #tpu.memory_space<vmem>>, vector<1x1xf32>
    %22 = vector.shape_cast %21 : vector<1x1xf32> to vector<1x1x1xf32>
    %23 = vector.broadcast %22 : vector<1x1x1xf32> to vector<1x1x8xf32>
    %24 = arith.addf %20, %23 : vector<1x1x8xf32>
    %c0_17 = arith.constant 0 : index
    %c0_18 = arith.constant 0 : index
    %c0_19 = arith.constant 0 : index
    %25 = vector.load %arg8[%c0_17, %c0_18, %c0_19] : memref<1x1x8xf32, #tpu.memory_space<vmem>>, vector<1x1x8xf32>
    tpu.vector_store %arg8[%c0_17, %c0_18, %c0_19], %24 {strides = array<i32>} : memref<1x1x8xf32, #tpu.memory_space<vmem>>, vector<1x1x8xf32>,
    return
  }
  func.func @transform_0(%arg0: i32) -> (i32, i32) {
    %c0_i32 = arith.constant 0 : i32
    %c0_i32_0 = arith.constant 0 : i32
    return %arg0, %c0_i32 : i32, i32
  }
  func.func @transform_1(%arg0: i32) -> (i32, i32) {
    %c0_i32 = arith.constant 0 : i32
    %c0_i32_0 = arith.constant 0 : i32
    %c0_i32_1 = arith.constant 0 : i32
    return %c0_i32, %c0_i32_0 : i32, i32
  }
  func.func @transform_2(%arg0: i32) -> (i32, i32) {
    %c0_i32 = arith.constant 0 : i32
    %c0_i32_0 = arith.constant 0 : i32
    %c0_i32_1 = arith.constant 0 : i32
    return %c0_i32, %c0_i32_0 : i32, i32
  }
  func.func @transform_3(%arg0: i32) -> (i32, i32) {
    %c0_i32 = arith.constant 0 : i32
    %c0_i32_0 = arith.constant 0 : i32
    %c0_i32_1 = arith.constant 0 : i32
    return %c0_i32, %c0_i32_0 : i32, i32
  }
  func.func @transform_4(%arg0: i32) -> (i32, i32) {
    %c0_i32 = arith.constant 0 : i32
    %c0_i32_0 = arith.constant 0 : i32
    %c0_i32_1 = arith.constant 0 : i32
    return %c0_i32, %c0_i32_0 : i32, i32
  }
  func.func @transform_5(%arg0: i32) -> (i32, i32) {
    %c0_i32 = arith.constant 0 : i32
    %c0_i32_0 = arith.constant 0 : i32
    %c0_i32_1 = arith.constant 0 : i32
    return %c0_i32, %c0_i32_0 : i32, i32
  }
  func.func @transform_6(%arg0: i32) -> (i32, i32) {
    %c0_i32 = arith.constant 0 : i32
    %c0_i32_0 = arith.constant 0 : i32
    %c0_i32_1 = arith.constant 0 : i32
    return %c0_i32, %c0_i32_0 : i32, i32
  }
  func.func @transform_7(%arg0: i32) -> (i32, i32, i32) {
    %c0_i32 = arith.constant 0 : i32
    %c0_i32_0 = arith.constant 0 : i32
    %c0_i32_1 = arith.constant 0 : i32
    return %arg0, %c0_i32, %c0_i32_0 : i32, i32, i32
  }
}

</mosaic_0001>

<bundles_post_ra>
// kernel: tpu_custom_call.1
= control target key start
LH: loop header
LB: loop body
LE: loop exit
PB: predicated region body
PF: predicated region fallthrough
CT: control target
= control target key end

     0   :  { %s453_s0 = inlined_call_operand.vmem [shape: bf16[8,32], index: 0, kind: input, shape index: {}]   ;;  %s454_s1 = inlined_call_operand.vmem [shape: bf16[32,128], index: 1, kind: input, shape index: {}]   ;;  %s455_s2 = inlined_call_operand.vmem [shape: f32[1,128], index: 2, kind: input, shape index: {}]   ;;  %s456_s3 = inlined_call_operand.vmem [shape: bf16[128,64], index: 3, kind: input, shape index: {}]   ;;  %s457_s4 = inlined_call_operand.vmem [shape: f32[1,64], index: 4, kind: input, shape index: {}]   ;;  %s458_s5 = inlined_call_operand.vmem [shape: f32[1,64], index: 5, kind: input, shape index: {}]   ;;  %s459_s6 = inlined_call_operand.<no memory space> [shape: f32[1,1], index: 6, kind: input, shape index: {}]   ;;  %s460_s7 = inlined_call_operand.hbm [shape: f32[1,1,8], index: 7, kind: output, shape index: {}]  }
   0x1   :  { %v12_v0 = vstv %s459_s6 }
   0x2   :  { %13 = vst [vmem:[#allocation2] sm:$0x1] %v12_v0 }
   0x3   :  { %v318_v1 = vld [vmem:[%s454_s1] sm:$0xff]   ;;  %v352_v2 = vmov 0.0   ;;  %v319_v3 = vld [vmem:[%s454_s1 + $0x8] sm:$0xff]   ;;  %vm353_vm0 = vmmov 0   ;;  %vm54_vm1 = vcmask 261120   ;;  %v322_v7 = vld [vmem:[%s456_s3 + $0x10] sm:$0xff]  }
   0x4   :  { %285 = vmatprep.subr.bf16.mxu0 %v352_v2  ;;  %293 = vmatprep.subr.bf16.mxu1 %v352_v2  ;;  %v320_v4 = vld [vmem:[%s456_s3] sm:$0xff]   ;;  %v321_v5 = vld [vmem:[%s456_s3 + $0x8] sm:$0xff]  }
   0x5   :  { %286 = vmatpush3.bf16.msra.mxu0 %v318_v1  ;;  %289 = vmatprep.mubr.msk.bf16.mxu0 %vm353_vm0, %v352_v2  ;;  %v30_v6 = vld [vmem:[%s453_s0] sm:$0xf] }
   0x6   :  { %287 = vmatprep.subr.bf16.mxu0 %v352_v2  ;;  %309 = vmatprep.mubr.msk.bf16.mxu1 %vm353_vm0, %v352_v2 }
   0x7   :  { %294 = vmatpush3.bf16.msra.mxu1 %v320_v4 }
   0x8   :  { %295 = vmatprep.subr.bf16.mxu1 %v352_v2 }
   0x9   :  { %288 = vmatpush3.bf16.msra.mxu0 %v319_v3 }
   0xb   :  { %296 = vmatpush3.bf16.msra.mxu1 %v321_v5 }
   0xc   :  { %290 = vmatmul.mubr.msk.bf16.vlgmr.msra.gmra.mrb[0].mxu0 %vm54_vm1, %v30_v6  ;;  %297 = vmatprep.subr.bf16.mxu1 %v352_v2 }
   0xd   :  { %14 = vsyncpa [#allocation4], 0  ;;  %v323_v8 = vld [vmem:[%s456_s3 + $0x18] sm:$0xff]   ;;  %v324_v9 = vld [vmem:[%s456_s3 + $0x20] sm:$0xff]   ;;  %v354_v21 = vmov 0   ;;  %vm220_vm2 = vcmask 523264   ;;  %v230_v33 = vlaneseq }
   0xe   :  { %v325_v10 = vld [vmem:[%s456_s3 + $0x28] sm:$0xff]   ;;  %v326_v11 = vld [vmem:[%s456_s3 + $0x30] sm:$0xff]   ;;  %v327_v12 = vld [vmem:[%s456_s3 + $0x38] sm:$0xff]   ;;  %317 = vset.pattern.permute.xlu0 %v354_v21  ;;  %vm243_vm3 = vcmask 57344  }
   0xf   :  { %298 = vmatpush3.bf16.msra.mxu1 %v322_v7  ;;  %v259_v13 = vld [vmem:[%s455_s2] ss:$0 sm:$0xff]  ;;  %v231_v34 = vshrl.u32 %v230_v33, 7  ;;  %v237_v37 = vand.u32 127, %v230_v33 }
  0x10   :  { %299 = vmatprep.subr.bf16.mxu1 %v352_v2  ;;  %v263_v22 = vld [vmem:[%s457_s4] ss:$0 sm:$0xff]  ;;  %s355_s4 = smov [#allocation3]  }
  0x11   :  { %v272_v27 = vld [vmem:[%s458_s5] ss:$0 sm:$0xff]  ;;  %v232_v36 = vsub.s32 0, %v231_v34  ;;  %v240_v40 = vsub.s32 %v237_v37, %v231_v34  ;;  %s251_s26 = sshll.u32 %s355_s4, 4  ;;  %s252_s26 = int_to_ptr.vmem [resolvable:$true] %s251_s26 }
  0x12   :  { %v224_v32 = vld [vmem:[#allocation2] sm:$0x1]  ;;  %s328_s5 = scalar_lea.vmem %s252_s26, 16  ;;  %s332_s27 = scalar_lea.vmem %s252_s26, 32 }
  0x13   :  { %300 = vmatpush3.bf16.msra.mxu1 %v323_v8  ;;  %p329_p0 = scmp.ne.s32.totalorder %s252_s26, %s328_s5  ;;  %p333_p1 = scmp.lt.s32.totalorder %s252_s26, %s252_s26 }
  0x14   :  { %301 = vmatprep.subr.bf16.mxu1 %v352_v2  ;;  %p334_p2 = scmp.lt.s32.totalorder %s332_s27, %s328_s5 }
  0x16   :  { %p335_p3 = por %p334_p2, %p333_p1 }
  0x17   :  { %302 = vmatpush3.bf16.msra.mxu1 %v324_v9 }
  0x18   :  { %303 = vmatprep.subr.bf16.mxu1 %v352_v2  ;;  %p336_p4 = pnand %p335_p3, %p329_p0 }
  0x1b   :  { %304 = vmatpush3.bf16.msra.mxu1 %v325_v10 }
  0x1c   :  { %305 = vmatprep.subr.bf16.mxu1 %v352_v2 }
  0x1f   :  { %306 = vmatpush3.bf16.msra.mxu1 %v326_v11 }
  0x20   :  { %307 = vmatprep.subr.bf16.mxu1 %v352_v2 }
  0x23   :  { %308 = vmatpush3.bf16.msra.mxu1 %v327_v12 }
  0xdf   :  { %v92_v14 = vpop.f32.mrb[0].mxu0 }
  0xe0   :  { %v93_v15 = vadd.f32 %v259_v13, %v92_v14  ;;  %v291_v16 = vpop.f32.mrb[1].mxu0 }
  0xe1   :  { %v95_v17 = vpop.f32.mrb[2].mxu0 }
  0xe2   :  { %v98_v18 = vmax.f32 %v93_v15, 0.0  ;;  %v292_v19 = vpop.f32.mrb[3].mxu0 }
  0xe4   :  { %v99_v20 = vpack.c.bf16 %v98_v18, %v98_v18 }
  0xe6   :  { %310 = vmatmul.mubr.bf16.vlgmr.msra.gmra.mrb[0].mxu1 %v99_v20 }
 0x1b9   :  { %v205_v23 = vpop.f32.mrb[0].mxu1 }
 0x1ba   :  { %v206_v24 = vadd.f32 %v263_v22, %v205_v23  ;;  %v311_v25 = vpop.f32.mrb[1].mxu1 }
 0x1bb   :  { %v208_v26 = vpop.f32.mrb[2].mxu1 }
 0x1bc   :  { %v211_v28 = vmax.f32 %v206_v24, 0.0  ;;  %v312_v29 = vpop.f32.mrb[3].mxu1 }
 0x1be   :  { %v219_v30 = vmul.f32 %v272_v27, %v211_v28 }
 0x1c0   :  { %v221_v31 = vsel %vm220_vm2, %v219_v30, 0.0 }
 0x1c1   :  { %222 = vadd.xlane.f32.xlu0 %v221_v31 }
 0x1d7   :  { %227 = vperm.xlu0 %317, %v224_v32  }
 0x24e   :  { %v223_v35 = vpop.xlane.xlu0 %222 }
 0x256   :  { %v228_v38 = vpop.permute.xlu0 %227 }
 0x257   :  { %v233_v39 = vrot.slane %v228_v38, %v232_v36 }
 0x259   :  { %v234_v41 = vadd.f32 %v233_v39, %v223_v35 }
 0x25b   :  { %v241_v42 = vrot.slane %v234_v41, %v240_v40 }
 0x25d   :  { %244 = vst.msk [vmem:[#allocation3] sm:$0x1] %vm243_vm3, %v241_v42 }
 0x25e   :  { %339 = shalt.err (!%p336_p4)
}
 0x25f   :  { %s340_s30 = scalar_lea.hbm %s460_s7, 16 }
 0x260   :  { %p341_p5 = scmp.ne.s32.totalorder %s460_s7, %s340_s30  ;;  %p344_p6 = scmp.lt.u32.totalorder %s340_s30, %s460_s7 }
 0x262   :  { %p346_p7 = pnand %p344_p6, %p341_p5 }
 0x264   :  { %349 = shalt.err (!%p346_p7)
}
 0x265   :  { %254 = dma.vmem_to_hbm [thread:$0]  %s252_s26, 16, %s460_s7, [#allocation4]  }
 0x266   :  { %350 = dma.done.wait [#allocation4], 16  }
 0x267   :  { %351 = vsyncadd [#allocation4], 4294967280 }
 0x268   :  { %258 = vsyncpa [#allocation4], 1 }

</bundles_post_ra>
